<compile_context>
chip_gen: v7x
topology: tpu7x:2x2x1
jax: 0.10.0
libtpu: 0.0.40
codegen_flags: <defaults>
</compile_context>

<pallas_src>
import functools

import jax
import jax.numpy as jnp
from jax.experimental import pallas as pl
from jax.experimental.pallas import tpu as pltpu


def _pick_seq_tile(S):
    # Largest sublane-aligned tile that divides S (caps DMA unroll at 64 rows).
    for t in (64, 32, 16, 8):
        if S % t == 0:
            return t
    return S  # fallback: one full-sequence tile (block == full dim is legal)


def _prompt_embed_kernel(tok_ref, learned_ref, wte_hbm, out_ref, buf, sems, *,
                         n_tokens, tile):
    b = pl.program_id(0)
    j = pl.program_id(1)
    base = j * tile

    # Phase 1: kick off all row-gather DMAs for this tile (concurrent in flight).
    for r in range(tile):
        s = base + r
        # Prefix positions never drive the DMA with (possibly garbage) prompt ids.
        tok = jnp.where(s < n_tokens, 0, tok_ref[b, s])
        pltpu.make_async_copy(
            wte_hbm.at[pl.ds(tok, 1), :], buf.at[pl.ds(r, 1), :], sems.at[r]
        ).start()

    # Phase 2: wait for all gathers.
    for r in range(tile):
        pltpu.make_async_copy(
            wte_hbm.at[pl.ds(0, 1), :], buf.at[pl.ds(r, 1), :], sems.at[r]
        ).wait()

    # Phase 3: single dense (tile, D) store; the concat with the learned prompt
    # prefix is a vectorized row select.
    row = base + jax.lax.broadcasted_iota(jnp.int32, (tile, 1), 0)
    out_ref[...] = jnp.where(
        row < n_tokens,
        learned_ref[...].astype(out_ref.dtype),
        buf[...].astype(out_ref.dtype),
    )


def prompt_embedding_forward(tokens, wte_weight, learned_embedding, n_tokens):
    """tokens: [B, S] int; wte_weight: [V, D]; learned_embedding: [N, D] -> [B, S, D]."""
    B, S = tokens.shape
    V, D = wte_weight.shape
    N = int(n_tokens)
    assert learned_embedding.shape == (N, D)
    assert 0 < N < S

    T = _pick_seq_tile(S)
    n_seq_tiles = S // T

    # Pad the (tiny) learned-prompt table so it can be block-indexed with the
    # same tile size as the output.  Tiles fully past the prefix read a clamped
    # (unused) block.
    P = max(T, pl.cdiv(N, T) * T)
    learned_padded = (
        jnp.zeros((P, D), wte_weight.dtype)
        .at[:N]
        .set(learned_embedding.astype(wte_weight.dtype))
    )
    n_learned_tiles = P // T

    # Clamp token ids so no out-of-range id can ever drive an HBM DMA.
    tokens = jnp.clip(tokens.astype(jnp.int32), 0, V - 1)

    def learned_index_map(b, j, tok_ref):
        return (jnp.minimum(j, n_learned_tiles - 1), 0)

    def out_index_map(b, j, tok_ref):
        return (b, j, 0)

    kernel = functools.partial(_prompt_embed_kernel, n_tokens=N, tile=T)

    return pl.pallas_call(
        kernel,
        out_shape=jax.ShapeDtypeStruct((B, S, D), wte_weight.dtype),
        grid_spec=pltpu.PrefetchScalarGridSpec(
            num_scalar_prefetch=1,                      # tokens -> SMEM
            grid=(B, n_seq_tiles),
            in_specs=[
                pl.BlockSpec((T, D), learned_index_map),   # learned-prompt tile
                pl.BlockSpec(memory_space=pl.ANY),         # wte stays in HBM
            ],
            out_specs=pl.BlockSpec((None, T, D), out_index_map),
            scratch_shapes=[
                pltpu.VMEM((T, D), wte_weight.dtype),      # gathered rows
                pltpu.SemaphoreType.DMA((T,)),             # one sem per row DMA
            ],
        ),
        compiler_params=pltpu.CompilerParams(
            dimension_semantics=("parallel", "arbitrary"),
        ),
    )(tokens, learned_padded, wte_weight)


if __name__ == "__main__":
    # Small, deterministic configuration (tile 0 is mixed prefix+gather,
    # tiles 1-2 are pure gather).
    B, S, V, D, N = 2, 24, 64, 128, 4  # batch, seq, vocab, hidden, n_tokens

    key = jax.random.PRNGKey(0)
    k_wte, k_tok = jax.random.split(key)

    wte_weight = jax.random.normal(k_wte, (V, D), dtype=jnp.float32)
    # initialize_from_vocab=True -> learned_embedding = wte.weight[:n_tokens]
    learned_embedding = wte_weight[:N]
    tokens = jax.random.randint(k_tok, (B, S), 0, V, dtype=jnp.int32)

    out = prompt_embedding_forward(tokens, wte_weight, learned_embedding, N)
    out = jax.block_until_ready(out)

    # Pure-JAX reference of the PyTorch forward.
    ref = jnp.concatenate(
        [
            jnp.broadcast_to(learned_embedding[None, :, :], (B, N, D)),
            wte_weight[tokens[:, N:]],
        ],
        axis=1,
    )

    assert out.shape == (B, S, D)
    assert bool(jnp.allclose(out, ref, atol=1e-6, rtol=1e-6))
    print("KERNEL_OK")
</pallas_src>

<mosaic_0001>
module attributes {stable_mosaic.version = 11 : i64} {
  func.func @_prompt_embed_kernel(%arg0: i32, %arg1: i32, %arg2: memref<2x24xi32, #tpu.memory_space<smem>>, %arg3: memref<8x128xf32, #tpu.memory_space<vmem>>, %arg4: memref<64x128xf32, #tpu.memory_space<any>>, %arg5: memref<1x8x128xf32, #tpu.memory_space<vmem>>, %arg6: memref<8x128xf32, #tpu.memory_space<vmem>>, %arg7: memref<8x!tpu.dma_semaphore, #tpu.memory_space<semaphore_mem>>) attributes {dimension_semantics = [#tpu.dimension_semantics<parallel>, #tpu.dimension_semantics<arbitrary>], iteration_bounds = array<i64: 2, 3>, scalar_prefetch = 1 : i64, scratch_operands = 2 : i64, tpu.core_type = #tpu.core_type<tc>, window_params = [{transform_indices = @transform_0, window_bounds = array<i64: 8, 128>}, {}, {transform_indices = @transform_2, window_bounds = array<i64: 1, 8, 128>}]} {
    %c8_i32 = arith.constant 8 : i32
    %0 = arith.muli %arg1, %c8_i32 : i32
    %c0_i32 = arith.constant 0 : i32
    %1 = arith.addi %0, %c0_i32 : i32
    %c4_i32 = arith.constant 4 : i32
    %2 = arith.cmpi slt, %1, %c4_i32 : i32
    %3 = arith.index_cast %arg0 : i32 to index
    %4 = arith.index_cast %1 : i32 to index
    %5 = memref.load %arg2[%3, %4] : memref<2x24xi32, #tpu.memory_space<smem>>
    %c0_i32_0 = arith.constant 0 : i32
    %6 = arith.select %2, %c0_i32_0, %5 : i32
    %c0_i32_1 = arith.constant 0 : i32
    %c0_i32_2 = arith.constant 0 : i32
    %7 = tpu.memref_slice %arg4[%6, %c0_i32_2] : memref<64x128xf32, #tpu.memory_space<any>> -> memref<1x128xf32, #tpu.memory_space<any>>
    %c0_i32_3 = arith.constant 0 : i32
    %c0_i32_4 = arith.constant 0 : i32
    %8 = tpu.memref_slice %arg6[%c0_i32_3, %c0_i32_4] : memref<8x128xf32, #tpu.memory_space<vmem>> -> memref<1x128xf32, #tpu.memory_space<vmem>>
    %9 = tpu.memref_slice %arg7[%c0_i32_1] : memref<8x!tpu.dma_semaphore, #tpu.memory_space<semaphore_mem>> -> memref<1x!tpu.dma_semaphore, #tpu.memory_space<semaphore_mem>>
    %10 = tpu.memref_squeeze %9 : memref<1x!tpu.dma_semaphore, #tpu.memory_space<semaphore_mem>> -> memref<!tpu.dma_semaphore, #tpu.memory_space<semaphore_mem>>
    tpu.enqueue_dma source(%7 : memref<1x128xf32, #tpu.memory_space<any>>) target(%8 : memref<1x128xf32, #tpu.memory_space<vmem>>) target_semaphore(%10 : memref<!tpu.dma_semaphore, #tpu.memory_space<semaphore_mem>>)
    %c1_i32 = arith.constant 1 : i32
    %11 = arith.addi %0, %c1_i32 : i32
    %c4_i32_5 = arith.constant 4 : i32
    %12 = arith.cmpi slt, %11, %c4_i32_5 : i32
    %13 = arith.index_cast %arg0 : i32 to index
    %14 = arith.index_cast %11 : i32 to index
    %15 = memref.load %arg2[%13, %14] : memref<2x24xi32, #tpu.memory_space<smem>>
    %c0_i32_6 = arith.constant 0 : i32
    %16 = arith.select %12, %c0_i32_6, %15 : i32
    %c1_i32_7 = arith.constant 1 : i32
    %c0_i32_8 = arith.constant 0 : i32
    %17 = tpu.memref_slice %arg4[%16, %c0_i32_8] : memref<64x128xf32, #tpu.memory_space<any>> -> memref<1x128xf32, #tpu.memory_space<any>>
    %c1_i32_9 = arith.constant 1 : i32
    %c0_i32_10 = arith.constant 0 : i32
    %18 = tpu.memref_slice %arg6[%c1_i32_9, %c0_i32_10] : memref<8x128xf32, #tpu.memory_space<vmem>> -> memref<1x128xf32, #tpu.memory_space<vmem>>
    %19 = tpu.memref_slice %arg7[%c1_i32_7] : memref<8x!tpu.dma_semaphore, #tpu.memory_space<semaphore_mem>> -> memref<1x!tpu.dma_semaphore, #tpu.memory_space<semaphore_mem>>
    %20 = tpu.memref_squeeze %19 : memref<1x!tpu.dma_semaphore, #tpu.memory_space<semaphore_mem>> -> memref<!tpu.dma_semaphore, #tpu.memory_space<semaphore_mem>>
    tpu.enqueue_dma source(%17 : memref<1x128xf32, #tpu.memory_space<any>>) target(%18 : memref<1x128xf32, #tpu.memory_space<vmem>>) target_semaphore(%20 : memref<!tpu.dma_semaphore, #tpu.memory_space<semaphore_mem>>)
    %c2_i32 = arith.constant 2 : i32
    %21 = arith.addi %0, %c2_i32 : i32
    %c4_i32_11 = arith.constant 4 : i32
    %22 = arith.cmpi slt, %21, %c4_i32_11 : i32
    %23 = arith.index_cast %arg0 : i32 to index
    %24 = arith.index_cast %21 : i32 to index
    %25 = memref.load %arg2[%23, %24] : memref<2x24xi32, #tpu.memory_space<smem>>
    %c0_i32_12 = arith.constant 0 : i32
    %26 = arith.select %22, %c0_i32_12, %25 : i32
    %c2_i32_13 = arith.constant 2 : i32
    %c0_i32_14 = arith.constant 0 : i32
    %27 = tpu.memref_slice %arg4[%26, %c0_i32_14] : memref<64x128xf32, #tpu.memory_space<any>> -> memref<1x128xf32, #tpu.memory_space<any>>
    %c2_i32_15 = arith.constant 2 : i32
    %c0_i32_16 = arith.constant 0 : i32
    %28 = tpu.memref_slice %arg6[%c2_i32_15, %c0_i32_16] : memref<8x128xf32, #tpu.memory_space<vmem>> -> memref<1x128xf32, #tpu.memory_space<vmem>>
    %29 = tpu.memref_slice %arg7[%c2_i32_13] : memref<8x!tpu.dma_semaphore, #tpu.memory_space<semaphore_mem>> -> memref<1x!tpu.dma_semaphore, #tpu.memory_space<semaphore_mem>>
    %30 = tpu.memref_squeeze %29 : memref<1x!tpu.dma_semaphore, #tpu.memory_space<semaphore_mem>> -> memref<!tpu.dma_semaphore, #tpu.memory_space<semaphore_mem>>
    tpu.enqueue_dma source(%27 : memref<1x128xf32, #tpu.memory_space<any>>) target(%28 : memref<1x128xf32, #tpu.memory_space<vmem>>) target_semaphore(%30 : memref<!tpu.dma_semaphore, #tpu.memory_space<semaphore_mem>>)
    %c3_i32 = arith.constant 3 : i32
    %31 = arith.addi %0, %c3_i32 : i32
    %c4_i32_17 = arith.constant 4 : i32
    %32 = arith.cmpi slt, %31, %c4_i32_17 : i32
    %33 = arith.index_cast %arg0 : i32 to index
    %34 = arith.index_cast %31 : i32 to index
    %35 = memref.load %arg2[%33, %34] : memref<2x24xi32, #tpu.memory_space<smem>>
    %c0_i32_18 = arith.constant 0 : i32
    %36 = arith.select %32, %c0_i32_18, %35 : i32
    %c3_i32_19 = arith.constant 3 : i32
    %c0_i32_20 = arith.constant 0 : i32
    %37 = tpu.memref_slice %arg4[%36, %c0_i32_20] : memref<64x128xf32, #tpu.memory_space<any>> -> memref<1x128xf32, #tpu.memory_space<any>>
    %c3_i32_21 = arith.constant 3 : i32
    %c0_i32_22 = arith.constant 0 : i32
    %38 = tpu.memref_slice %arg6[%c3_i32_21, %c0_i32_22] : memref<8x128xf32, #tpu.memory_space<vmem>> -> memref<1x128xf32, #tpu.memory_space<vmem>>
    %39 = tpu.memref_slice %arg7[%c3_i32_19] : memref<8x!tpu.dma_semaphore, #tpu.memory_space<semaphore_mem>> -> memref<1x!tpu.dma_semaphore, #tpu.memory_space<semaphore_mem>>
    %40 = tpu.memref_squeeze %39 : memref<1x!tpu.dma_semaphore, #tpu.memory_space<semaphore_mem>> -> memref<!tpu.dma_semaphore, #tpu.memory_space<semaphore_mem>>
    tpu.enqueue_dma source(%37 : memref<1x128xf32, #tpu.memory_space<any>>) target(%38 : memref<1x128xf32, #tpu.memory_space<vmem>>) target_semaphore(%40 : memref<!tpu.dma_semaphore, #tpu.memory_space<semaphore_mem>>)
    %c4_i32_23 = arith.constant 4 : i32
    %41 = arith.addi %0, %c4_i32_23 : i32
    %c4_i32_24 = arith.constant 4 : i32
    %42 = arith.cmpi slt, %41, %c4_i32_24 : i32
    %43 = arith.index_cast %arg0 : i32 to index
    %44 = arith.index_cast %41 : i32 to index
    %45 = memref.load %arg2[%43, %44] : memref<2x24xi32, #tpu.memory_space<smem>>
    %c0_i32_25 = arith.constant 0 : i32
    %46 = arith.select %42, %c0_i32_25, %45 : i32
    %c4_i32_26 = arith.constant 4 : i32
    %c0_i32_27 = arith.constant 0 : i32
    %47 = tpu.memref_slice %arg4[%46, %c0_i32_27] : memref<64x128xf32, #tpu.memory_space<any>> -> memref<1x128xf32, #tpu.memory_space<any>>
    %c4_i32_28 = arith.constant 4 : i32
    %c0_i32_29 = arith.constant 0 : i32
    %48 = tpu.memref_slice %arg6[%c4_i32_28, %c0_i32_29] : memref<8x128xf32, #tpu.memory_space<vmem>> -> memref<1x128xf32, #tpu.memory_space<vmem>>
    %49 = tpu.memref_slice %arg7[%c4_i32_26] : memref<8x!tpu.dma_semaphore, #tpu.memory_space<semaphore_mem>> -> memref<1x!tpu.dma_semaphore, #tpu.memory_space<semaphore_mem>>
    %50 = tpu.memref_squeeze %49 : memref<1x!tpu.dma_semaphore, #tpu.memory_space<semaphore_mem>> -> memref<!tpu.dma_semaphore, #tpu.memory_space<semaphore_mem>>
    tpu.enqueue_dma source(%47 : memref<1x128xf32, #tpu.memory_space<any>>) target(%48 : memref<1x128xf32, #tpu.memory_space<vmem>>) target_semaphore(%50 : memref<!tpu.dma_semaphore, #tpu.memory_space<semaphore_mem>>)
    %c5_i32 = arith.constant 5 : i32
    %51 = arith.addi %0, %c5_i32 : i32
    %c4_i32_30 = arith.constant 4 : i32
    %52 = arith.cmpi slt, %51, %c4_i32_30 : i32
    %53 = arith.index_cast %arg0 : i32 to index
    %54 = arith.index_cast %51 : i32 to index
    %55 = memref.load %arg2[%53, %54] : memref<2x24xi32, #tpu.memory_space<smem>>
    %c0_i32_31 = arith.constant 0 : i32
    %56 = arith.select %52, %c0_i32_31, %55 : i32
    %c5_i32_32 = arith.constant 5 : i32
    %c0_i32_33 = arith.constant 0 : i32
    %57 = tpu.memref_slice %arg4[%56, %c0_i32_33] : memref<64x128xf32, #tpu.memory_space<any>> -> memref<1x128xf32, #tpu.memory_space<any>>
    %c5_i32_34 = arith.constant 5 : i32
    %c0_i32_35 = arith.constant 0 : i32
    %58 = tpu.memref_slice %arg6[%c5_i32_34, %c0_i32_35] : memref<8x128xf32, #tpu.memory_space<vmem>> -> memref<1x128xf32, #tpu.memory_space<vmem>>
    %59 = tpu.memref_slice %arg7[%c5_i32_32] : memref<8x!tpu.dma_semaphore, #tpu.memory_space<semaphore_mem>> -> memref<1x!tpu.dma_semaphore, #tpu.memory_space<semaphore_mem>>
    %60 = tpu.memref_squeeze %59 : memref<1x!tpu.dma_semaphore, #tpu.memory_space<semaphore_mem>> -> memref<!tpu.dma_semaphore, #tpu.memory_space<semaphore_mem>>
    tpu.enqueue_dma source(%57 : memref<1x128xf32, #tpu.memory_space<any>>) target(%58 : memref<1x128xf32, #tpu.memory_space<vmem>>) target_semaphore(%60 : memref<!tpu.dma_semaphore, #tpu.memory_space<semaphore_mem>>)
    %c6_i32 = arith.constant 6 : i32
    %61 = arith.addi %0, %c6_i32 : i32
    %c4_i32_36 = arith.constant 4 : i32
    %62 = arith.cmpi slt, %61, %c4_i32_36 : i32
    %63 = arith.index_cast %arg0 : i32 to index
    %64 = arith.index_cast %61 : i32 to index
    %65 = memref.load %arg2[%63, %64] : memref<2x24xi32, #tpu.memory_space<smem>>
    %c0_i32_37 = arith.constant 0 : i32
    %66 = arith.select %62, %c0_i32_37, %65 : i32
    %c6_i32_38 = arith.constant 6 : i32
    %c0_i32_39 = arith.constant 0 : i32
    %67 = tpu.memref_slice %arg4[%66, %c0_i32_39] : memref<64x128xf32, #tpu.memory_space<any>> -> memref<1x128xf32, #tpu.memory_space<any>>
    %c6_i32_40 = arith.constant 6 : i32
    %c0_i32_41 = arith.constant 0 : i32
    %68 = tpu.memref_slice %arg6[%c6_i32_40, %c0_i32_41] : memref<8x128xf32, #tpu.memory_space<vmem>> -> memref<1x128xf32, #tpu.memory_space<vmem>>
    %69 = tpu.memref_slice %arg7[%c6_i32_38] : memref<8x!tpu.dma_semaphore, #tpu.memory_space<semaphore_mem>> -> memref<1x!tpu.dma_semaphore, #tpu.memory_space<semaphore_mem>>
    %70 = tpu.memref_squeeze %69 : memref<1x!tpu.dma_semaphore, #tpu.memory_space<semaphore_mem>> -> memref<!tpu.dma_semaphore, #tpu.memory_space<semaphore_mem>>
    tpu.enqueue_dma source(%67 : memref<1x128xf32, #tpu.memory_space<any>>) target(%68 : memref<1x128xf32, #tpu.memory_space<vmem>>) target_semaphore(%70 : memref<!tpu.dma_semaphore, #tpu.memory_space<semaphore_mem>>)
    %c7_i32 = arith.constant 7 : i32
    %71 = arith.addi %0, %c7_i32 : i32
    %c4_i32_42 = arith.constant 4 : i32
    %72 = arith.cmpi slt, %71, %c4_i32_42 : i32
    %73 = arith.index_cast %arg0 : i32 to index
    %74 = arith.index_cast %71 : i32 to index
    %75 = memref.load %arg2[%73, %74] : memref<2x24xi32, #tpu.memory_space<smem>>
    %c0_i32_43 = arith.constant 0 : i32
    %76 = arith.select %72, %c0_i32_43, %75 : i32
    %c7_i32_44 = arith.constant 7 : i32
    %c0_i32_45 = arith.constant 0 : i32
    %77 = tpu.memref_slice %arg4[%76, %c0_i32_45] : memref<64x128xf32, #tpu.memory_space<any>> -> memref<1x128xf32, #tpu.memory_space<any>>
    %c7_i32_46 = arith.constant 7 : i32
    %c0_i32_47 = arith.constant 0 : i32
    %78 = tpu.memref_slice %arg6[%c7_i32_46, %c0_i32_47] : memref<8x128xf32, #tpu.memory_space<vmem>> -> memref<1x128xf32, #tpu.memory_space<vmem>>
    %79 = tpu.memref_slice %arg7[%c7_i32_44] : memref<8x!tpu.dma_semaphore, #tpu.memory_space<semaphore_mem>> -> memref<1x!tpu.dma_semaphore, #tpu.memory_space<semaphore_mem>>
    %80 = tpu.memref_squeeze %79 : memref<1x!tpu.dma_semaphore, #tpu.memory_space<semaphore_mem>> -> memref<!tpu.dma_semaphore, #tpu.memory_space<semaphore_mem>>
    tpu.enqueue_dma source(%77 : memref<1x128xf32, #tpu.memory_space<any>>) target(%78 : memref<1x128xf32, #tpu.memory_space<vmem>>) target_semaphore(%80 : memref<!tpu.dma_semaphore, #tpu.memory_space<semaphore_mem>>)
    %c0_i32_48 = arith.constant 0 : i32
    %c0_i32_49 = arith.constant 0 : i32
    %c0_i32_50 = arith.constant 0 : i32
    %81 = tpu.memref_slice %arg4[%c0_i32_49, %c0_i32_50] : memref<64x128xf32, #tpu.memory_space<any>> -> memref<1x128xf32, #tpu.memory_space<any>>
    %c0_i32_51 = arith.constant 0 : i32
    %c0_i32_52 = arith.constant 0 : i32
    %82 = tpu.memref_slice %arg6[%c0_i32_51, %c0_i32_52] : memref<8x128xf32, #tpu.memory_space<vmem>> -> memref<1x128xf32, #tpu.memory_space<vmem>>
    %83 = tpu.memref_slice %arg7[%c0_i32_48] : memref<8x!tpu.dma_semaphore, #tpu.memory_space<semaphore_mem>> -> memref<1x!tpu.dma_semaphore, #tpu.memory_space<semaphore_mem>>
    %84 = tpu.memref_squeeze %83 : memref<1x!tpu.dma_semaphore, #tpu.memory_space<semaphore_mem>> -> memref<!tpu.dma_semaphore, #tpu.memory_space<semaphore_mem>>
    tpu.wait_dma2 semaphore(%84 : memref<!tpu.dma_semaphore, #tpu.memory_space<semaphore_mem>>) src(%81 : memref<1x128xf32, #tpu.memory_space<any>>) dst(%82 : memref<1x128xf32, #tpu.memory_space<vmem>>)
    %c1_i32_53 = arith.constant 1 : i32
    %c0_i32_54 = arith.constant 0 : i32
    %c0_i32_55 = arith.constant 0 : i32
    %85 = tpu.memref_slice %arg4[%c0_i32_54, %c0_i32_55] : memref<64x128xf32, #tpu.memory_space<any>> -> memref<1x128xf32, #tpu.memory_space<any>>
    %c1_i32_56 = arith.constant 1 : i32
    %c0_i32_57 = arith.constant 0 : i32
    %86 = tpu.memref_slice %arg6[%c1_i32_56, %c0_i32_57] : memref<8x128xf32, #tpu.memory_space<vmem>> -> memref<1x128xf32, #tpu.memory_space<vmem>>
    %87 = tpu.memref_slice %arg7[%c1_i32_53] : memref<8x!tpu.dma_semaphore, #tpu.memory_space<semaphore_mem>> -> memref<1x!tpu.dma_semaphore, #tpu.memory_space<semaphore_mem>>
    %88 = tpu.memref_squeeze %87 : memref<1x!tpu.dma_semaphore, #tpu.memory_space<semaphore_mem>> -> memref<!tpu.dma_semaphore, #tpu.memory_space<semaphore_mem>>
    tpu.wait_dma2 semaphore(%88 : memref<!tpu.dma_semaphore, #tpu.memory_space<semaphore_mem>>) src(%85 : memref<1x128xf32, #tpu.memory_space<any>>) dst(%86 : memref<1x128xf32, #tpu.memory_space<vmem>>)
    %c2_i32_58 = arith.constant 2 : i32
    %c0_i32_59 = arith.constant 0 : i32
    %c0_i32_60 = arith.constant 0 : i32
    %89 = tpu.memref_slice %arg4[%c0_i32_59, %c0_i32_60] : memref<64x128xf32, #tpu.memory_space<any>> -> memref<1x128xf32, #tpu.memory_space<any>>
    %c2_i32_61 = arith.constant 2 : i32
    %c0_i32_62 = arith.constant 0 : i32
    %90 = tpu.memref_slice %arg6[%c2_i32_61, %c0_i32_62] : memref<8x128xf32, #tpu.memory_space<vmem>> -> memref<1x128xf32, #tpu.memory_space<vmem>>
    %91 = tpu.memref_slice %arg7[%c2_i32_58] : memref<8x!tpu.dma_semaphore, #tpu.memory_space<semaphore_mem>> -> memref<1x!tpu.dma_semaphore, #tpu.memory_space<semaphore_mem>>
    %92 = tpu.memref_squeeze %91 : memref<1x!tpu.dma_semaphore, #tpu.memory_space<semaphore_mem>> -> memref<!tpu.dma_semaphore, #tpu.memory_space<semaphore_mem>>
    tpu.wait_dma2 semaphore(%92 : memref<!tpu.dma_semaphore, #tpu.memory_space<semaphore_mem>>) src(%89 : memref<1x128xf32, #tpu.memory_space<any>>) dst(%90 : memref<1x128xf32, #tpu.memory_space<vmem>>)
    %c3_i32_63 = arith.constant 3 : i32
    %c0_i32_64 = arith.constant 0 : i32
    %c0_i32_65 = arith.constant 0 : i32
    %93 = tpu.memref_slice %arg4[%c0_i32_64, %c0_i32_65] : memref<64x128xf32, #tpu.memory_space<any>> -> memref<1x128xf32, #tpu.memory_space<any>>
    %c3_i32_66 = arith.constant 3 : i32
    %c0_i32_67 = arith.constant 0 : i32
    %94 = tpu.memref_slice %arg6[%c3_i32_66, %c0_i32_67] : memref<8x128xf32, #tpu.memory_space<vmem>> -> memref<1x128xf32, #tpu.memory_space<vmem>>
    %95 = tpu.memref_slice %arg7[%c3_i32_63] : memref<8x!tpu.dma_semaphore, #tpu.memory_space<semaphore_mem>> -> memref<1x!tpu.dma_semaphore, #tpu.memory_space<semaphore_mem>>
    %96 = tpu.memref_squeeze %95 : memref<1x!tpu.dma_semaphore, #tpu.memory_space<semaphore_mem>> -> memref<!tpu.dma_semaphore, #tpu.memory_space<semaphore_mem>>
    tpu.wait_dma2 semaphore(%96 : memref<!tpu.dma_semaphore, #tpu.memory_space<semaphore_mem>>) src(%93 : memref<1x128xf32, #tpu.memory_space<any>>) dst(%94 : memref<1x128xf32, #tpu.memory_space<vmem>>)
    %c4_i32_68 = arith.constant 4 : i32
    %c0_i32_69 = arith.constant 0 : i32
    %c0_i32_70 = arith.constant 0 : i32
    %97 = tpu.memref_slice %arg4[%c0_i32_69, %c0_i32_70] : memref<64x128xf32, #tpu.memory_space<any>> -> memref<1x128xf32, #tpu.memory_space<any>>
    %c4_i32_71 = arith.constant 4 : i32
    %c0_i32_72 = arith.constant 0 : i32
    %98 = tpu.memref_slice %arg6[%c4_i32_71, %c0_i32_72] : memref<8x128xf32, #tpu.memory_space<vmem>> -> memref<1x128xf32, #tpu.memory_space<vmem>>
    %99 = tpu.memref_slice %arg7[%c4_i32_68] : memref<8x!tpu.dma_semaphore, #tpu.memory_space<semaphore_mem>> -> memref<1x!tpu.dma_semaphore, #tpu.memory_space<semaphore_mem>>
    %100 = tpu.memref_squeeze %99 : memref<1x!tpu.dma_semaphore, #tpu.memory_space<semaphore_mem>> -> memref<!tpu.dma_semaphore, #tpu.memory_space<semaphore_mem>>
    tpu.wait_dma2 semaphore(%100 : memref<!tpu.dma_semaphore, #tpu.memory_space<semaphore_mem>>) src(%97 : memref<1x128xf32, #tpu.memory_space<any>>) dst(%98 : memref<1x128xf32, #tpu.memory_space<vmem>>)
    %c5_i32_73 = arith.constant 5 : i32
    %c0_i32_74 = arith.constant 0 : i32
    %c0_i32_75 = arith.constant 0 : i32
    %101 = tpu.memref_slice %arg4[%c0_i32_74, %c0_i32_75] : memref<64x128xf32, #tpu.memory_space<any>> -> memref<1x128xf32, #tpu.memory_space<any>>
    %c5_i32_76 = arith.constant 5 : i32
    %c0_i32_77 = arith.constant 0 : i32
    %102 = tpu.memref_slice %arg6[%c5_i32_76, %c0_i32_77] : memref<8x128xf32, #tpu.memory_space<vmem>> -> memref<1x128xf32, #tpu.memory_space<vmem>>
    %103 = tpu.memref_slice %arg7[%c5_i32_73] : memref<8x!tpu.dma_semaphore, #tpu.memory_space<semaphore_mem>> -> memref<1x!tpu.dma_semaphore, #tpu.memory_space<semaphore_mem>>
    %104 = tpu.memref_squeeze %103 : memref<1x!tpu.dma_semaphore, #tpu.memory_space<semaphore_mem>> -> memref<!tpu.dma_semaphore, #tpu.memory_space<semaphore_mem>>
    tpu.wait_dma2 semaphore(%104 : memref<!tpu.dma_semaphore, #tpu.memory_space<semaphore_mem>>) src(%101 : memref<1x128xf32, #tpu.memory_space<any>>) dst(%102 : memref<1x128xf32, #tpu.memory_space<vmem>>)
    %c6_i32_78 = arith.constant 6 : i32
    %c0_i32_79 = arith.constant 0 : i32
    %c0_i32_80 = arith.constant 0 : i32
    %105 = tpu.memref_slice %arg4[%c0_i32_79, %c0_i32_80] : memref<64x128xf32, #tpu.memory_space<any>> -> memref<1x128xf32, #tpu.memory_space<any>>
    %c6_i32_81 = arith.constant 6 : i32
    %c0_i32_82 = arith.constant 0 : i32
    %106 = tpu.memref_slice %arg6[%c6_i32_81, %c0_i32_82] : memref<8x128xf32, #tpu.memory_space<vmem>> -> memref<1x128xf32, #tpu.memory_space<vmem>>
    %107 = tpu.memref_slice %arg7[%c6_i32_78] : memref<8x!tpu.dma_semaphore, #tpu.memory_space<semaphore_mem>> -> memref<1x!tpu.dma_semaphore, #tpu.memory_space<semaphore_mem>>
    %108 = tpu.memref_squeeze %107 : memref<1x!tpu.dma_semaphore, #tpu.memory_space<semaphore_mem>> -> memref<!tpu.dma_semaphore, #tpu.memory_space<semaphore_mem>>
    tpu.wait_dma2 semaphore(%108 : memref<!tpu.dma_semaphore, #tpu.memory_space<semaphore_mem>>) src(%105 : memref<1x128xf32, #tpu.memory_space<any>>) dst(%106 : memref<1x128xf32, #tpu.memory_space<vmem>>)
    %c7_i32_83 = arith.constant 7 : i32
    %c0_i32_84 = arith.constant 0 : i32
    %c0_i32_85 = arith.constant 0 : i32
    %109 = tpu.memref_slice %arg4[%c0_i32_84, %c0_i32_85] : memref<64x128xf32, #tpu.memory_space<any>> -> memref<1x128xf32, #tpu.memory_space<any>>
    %c7_i32_86 = arith.constant 7 : i32
    %c0_i32_87 = arith.constant 0 : i32
    %110 = tpu.memref_slice %arg6[%c7_i32_86, %c0_i32_87] : memref<8x128xf32, #tpu.memory_space<vmem>> -> memref<1x128xf32, #tpu.memory_space<vmem>>
    %111 = tpu.memref_slice %arg7[%c7_i32_83] : memref<8x!tpu.dma_semaphore, #tpu.memory_space<semaphore_mem>> -> memref<1x!tpu.dma_semaphore, #tpu.memory_space<semaphore_mem>>
    %112 = tpu.memref_squeeze %111 : memref<1x!tpu.dma_semaphore, #tpu.memory_space<semaphore_mem>> -> memref<!tpu.dma_semaphore, #tpu.memory_space<semaphore_mem>>
    tpu.wait_dma2 semaphore(%112 : memref<!tpu.dma_semaphore, #tpu.memory_space<semaphore_mem>>) src(%109 : memref<1x128xf32, #tpu.memory_space<any>>) dst(%110 : memref<1x128xf32, #tpu.memory_space<vmem>>)
    %113 = tpu.iota {dimensions = array<i32: 0>} : vector<8x1xi32>
    %114 = vector.broadcast %0 : i32 to vector<8x1xi32>
    %115 = arith.addi %114, %113 : vector<8x1xi32>
    %c4_i32_88 = arith.constant 4 : i32
    %116 = vector.broadcast %c4_i32_88 : i32 to vector<8x1xi32>
    %117 = arith.cmpi slt, %115, %116 : vector<8x1xi32>
    %c0 = arith.constant 0 : index
    %c0_89 = arith.constant 0 : index
    %118 = vector.load %arg3[%c0, %c0_89] : memref<8x128xf32, #tpu.memory_space<vmem>>, vector<8x128xf32>
    %c0_90 = arith.constant 0 : index
    %c0_91 = arith.constant 0 : index
    %119 = vector.load %arg6[%c0_90, %c0_91] : memref<8x128xf32, #tpu.memory_space<vmem>>, vector<8x128xf32>
    %120 = vector.shape_cast %117 : vector<8x1xi1> to vector<8x1xi1>
    %121 = vector.broadcast %120 : vector<8x1xi1> to vector<8x128xi1>
    %122 = arith.select %121, %118, %119 : vector<8x128xi1>, vector<8x128xf32>
    %c0_92 = arith.constant 0 : index
    %c0_93 = arith.constant 0 : index
    %c0_94 = arith.constant 0 : index
    %123 = vector.load %arg5[%c0_92, %c0_93, %c0_94] : memref<1x8x128xf32, #tpu.memory_space<vmem>>, vector<1x8x128xf32>
    %124 = vector.shape_cast %123 : vector<1x8x128xf32> to vector<8x128xf32>
    %125 = vector.shape_cast %122 : vector<8x128xf32> to vector<1x8x128xf32>
    tpu.vector_store %arg5[%c0_92, %c0_93, %c0_94], %125 {strides = array<i32>} : memref<1x8x128xf32, #tpu.memory_space<vmem>>, vector<1x8x128xf32>,
    return
  }
  func.func @transform_0(%arg0: i32, %arg1: i32, %arg2: memref<2x24xi32, #tpu.memory_space<smem>>) -> (i32, i32) {
    %c0_i32 = arith.constant 0 : i32
    %0 = arith.minsi %arg1, %c0_i32 : i32
    %c0_i32_0 = arith.constant 0 : i32
    %c0_i32_1 = arith.constant 0 : i32
    return %0, %c0_i32_0 : i32, i32
  }
  func.func @transform_2(%arg0: i32, %arg1: i32, %arg2: memref<2x24xi32, #tpu.memory_space<smem>>) -> (i32, i32, i32) {
    %c0_i32 = arith.constant 0 : i32
    %c0_i32_0 = arith.constant 0 : i32
    return %arg0, %arg1, %c0_i32 : i32, i32, i32
  }
}

</mosaic_0001>

<bundles_post_ra>
// kernel: tpu_custom_call.1
= control target key start
LH: loop header
LB: loop body
LE: loop exit
PB: predicated region body
PF: predicated region fallthrough
CT: control target
= control target key end

     0   :  { %s1511_s0 = inlined_call_operand.hbm [shape: s32[2,24], index: 0, kind: input, shape index: {}]   ;;  %s1512_s1 = inlined_call_operand.hbm [shape: f32[8,128], index: 1, kind: input, shape index: {}]   ;;  %s1513_s2 = inlined_call_operand.hbm [shape: f32[64,128], index: 2, kind: input, shape index: {}]   ;;  %s1514_s3 = inlined_call_operand.hbm [shape: f32[2,24,128], index: 3, kind: output, shape index: {}]  }
   0x1   :  { %1530 = sst [smem:[#allocation49_spill]] %s1512_s1  ;;  %s714_s14 = scalar_lea.hbm %s1511_s0, 32 }
   0x2   :  { %1531 = sst [smem:[#allocation50_spill]] %s1514_s3  ;;  %p715_p0 = scmp.ne.s32.totalorder %s1511_s0, %s714_s14 }
   0x3   :  { %p718_p1 = scmp.lt.u32.totalorder %s714_s14, %s1511_s0 }
   0x5   :  { %p720_p2 = pnand %p718_p1, %p715_p0 }
   0x7   :  { %723 = shalt.err (!%p720_p2)  }
   0x8   :  { %s1085_s19 = smov [#allocation5]  }
   0x9   :  { %9 = dma.hbm_to_smem %s1511_s0, 32, %s1085_s19, [#allocation4] }
   0xa   :  { %1018 = dma.done.wait [#allocation4], 32 }
   0xb   :  { %1019 = vsyncadd [#allocation4], 4294967264 }
   0xc   :  { %11 = sfence }
   0xd   :  { %12 = vsyncpa [#allocation7], 0 }
   0xe   :  { %14 = vsyncpa [#allocation7 + $0x1], 0 }
   0xf   :  { %15 = vsyncpa [#allocation8], 0 }
  0x10   :  { %17 = vsyncpa [#allocation8 + $0x1], 0  ;;  %s1128_s22 = smov 0   ;;  %s1130_s23 = smov 0  }
  0x11   :  { %s1132_s24 = smov 0   ;;  %s1134_s25 = smov 0  }
  0x12   :  { %s1136_s26 = smov 0   ;;  %s1138_s27 = smov 0  }
  0x13   :  { %s1140_s0 = smov 0   ;;  %s1142_s28 = smov 0  }
  0x14   :  { %s1144_s29 = smov 0   ;;  %s1146_s30 = smov 0  }
  0x15 LB: > { %1532 = sst [smem:[#allocation39_spill]] %s1047_s22  ;;  %s564_s4 = sadd.s32 4294967295, %s1083_s30   ;;  %s1083_s30 = sphi %s1146_s30, %s23_s30   ;;  %s1079_s29 = sphi %s1144_s29, %s1566_s29   ;;  %s1075_s28 = sphi %s1142_s28, %s1565_s28   ;;  %s1071_s0 = sphi %s1140_s0, %s1564_s0   ;;  %s1067_s27 = sphi %s1138_s27, %s1563_s27   ;;  %s1063_s26 = sphi %s1136_s26, %s1495_s26   ;;  %s1059_s25 = sphi %s1134_s25, %s1562_s25   ;;  %s1055_s24 = sphi %s1132_s24, %s1561_s24   ;;  %s1051_s23 = sphi %s1130_s23, %s1568_s23   ;;  %s1047_s22 = sphi %s1128_s22, %s1567_s22  }
  0x16   : > { %1533 = sst [smem:[#allocation40_spill]] %s1055_s24  ;;  %s565_s5 = sadd.s32 4294967294, %s1083_s30  }
  0x17   : > { %1534 = sst [smem:[#allocation41_spill]] %s1063_s26  ;;  %s32_s6 = sadd.s32 1, %s1075_s28 }
  0x18   : > { %1535 = sst [smem:[#allocation42_spill]] %s1075_s28  ;;  %s35_s7 = sadd.s32 1, %s1079_s29 }
  0x19   : > { %1536 = sst [smem:[#allocation43_spill]] %s1079_s29  ;;  %p33_p3 = scmp.ge.s32.totalorder %s32_s6, 3 }
  0x1a   : > { %1537 = sst [smem:[#allocation44_spill]] %s1083_s30  ;;  %p1044_p4 = scmp.ne.s32.totalorder %s1063_s26, 0 }
  0x1b   : > { %s1570_s6 = smov (%p33_p3, %s32_s6), 0  ;;  %s1572_s7 = smov (!%p33_p3, %s35_s7), %s1079_s29 }
  0x1c   : > { %1538 = sst [smem:[#allocation45_spill]] %s1570_s6  ;;  %p37_p5 = scmp.ge.s32.totalorder %s1572_s7, 2 }
  0x1d   : > { %p54_p6 = scmp.eq.s32.totalorder %s1083_s30, 0  ;;  %p59_p7 = scmp.ne.s32.totalorder %s1063_s26, %s1059_s25 }
  0x1e   : > { %s1574_s7 = smov (%p37_p5, %s1572_s7), 0  ;;  %p60_p9 = scmp.eq.s32.totalorder %s564_s4, 0 }
  0x1f   : > { %1539 = sst [smem:[#allocation46_spill]] %s1574_s7  ;;  %p1188_p8 = por %p1044_p4, %p54_p6 }
  0x20   : > { %s69_s9 = ssub.s32 %s1079_s29, %s1574_s7  ;;  %p1194_p10 = por %p60_p9, %p59_p7 }
  0x21   : > { %s70_s11 = ssub.s32 %s1075_s28, %s1570_s6  ;;  %s74_s12 = sadd.s32 1, %s1055_s24 }
  0x22   : > { %s1541_s10 = scalar_select %p1194_p10, 1, 0 }
  0x23   : > { %s71_s13 = sor.u32 %s70_s11, %s69_s9  ;;  %p84_p11 = scmp.ne.s32.totalorder %s1055_s24, %s1051_s23 }
  0x24   : > { %p72_p12 = scmp.eq.s32.totalorder %s71_s13, 0  ;;  %p85_p13 = scmp.eq.s32.totalorder %s564_s4, 5 }
  0x25   : > { %p90_p0 = scmp.ne.s32.totalorder %s1051_s23, %s1047_s22  ;;  %p91_p1 = scmp.eq.s32.totalorder %s565_s5, 5 }
  0x26   : > { %s1206_s14 = scalar_select %p72_p12, %s1055_s24, %s74_s12  }
  0x27   : > { %p1208_p2 = por %p85_p13, %p84_p11  ;;  %p1212_p3 = por %p91_p1, %p90_p0 }
  0x28   : > { %1542 = sst [smem:[#allocation47_spill]] %s1206_s14  ;;  %p615_p4 = scmp.lt.s32.totalorder %s1083_s30, 6 }
  0x29   : > { %s1543_s15 = scalar_select %p1208_p2, 1, 0 }
  0x2a   : > { %s1544_s16 = scalar_select %p1212_p3, 1, 0 }
  0x2b   : > { %s1086_s17 = smov [#allocation6]   ;;  %p1219_p5 = pnand %p615_p4, %p1188_p8 }
  0x2c   : > { %1545 = sst [smem:[#allocation48_spill]] %s1544_s16  ;;  %s124_s18 = sshll.u32 %s1086_s17, 4  ;;  %s125_s18 = int_to_ptr.vmem [resolvable:$true] %s124_s18 }
  0x2d   : > { %s1546_s19 = scalar_select %p1219_p5, 1, 0 }
  0x2e   : > { %s1547_s1 = sld [smem:[#allocation49_spill]]  ;;  %p726_p11 = pneg %p1219_p5 }
  0x34   : > { %s724_s25 = scalar_lea.hbm %s1547_s1, 128 }
  0x35   : > { %p725_p9 = scmp.ne.s32.totalorder %s1547_s1, %s724_s25  ;;  %p731_p8 = scmp.lt.u32.totalorder %s724_s25, %s724_s25 }
  0x36   : > { %p733_p0 = scmp.lt.u32.totalorder %s724_s25, %s1547_s1 }
  0x37   : > { %p727_p12 = pnand %p726_p11, %p725_p9 }
  0x38   : > { %p734_p1 = por %p733_p0, %p731_p8 }
  0x39   : > { %p728_p13 = pneg %p727_p12 }
  0x3b   : > { %p735_p4 = pnand %p734_p1, %p728_p13 }
  0x3d   : > { %738 = shalt.err (!%p735_p4)
}
  0x3e   : > { %s739_s11 = scalar_lea.vmem %s125_s18, 128  ;;  %s746_s12 = scalar_lea.vmem %s125_s18, 256 }
  0x3f   : > { %p740_p6 = scmp.ne.s32.totalorder %s125_s18, %s739_s11  ;;  %p747_p2 = scmp.lt.s32.totalorder %s125_s18, %s125_s18 }
  0x40   : > { %p748_p10 = scmp.lt.s32.totalorder %s746_s12, %s739_s11 }
  0x41   : > { %p742_p7 = pnand %p740_p6, %p726_p11 }
  0x42   : > { %p749_p5 = por %p748_p10, %p747_p2 }
  0x43   : > { %p743_p3 = pneg %p742_p7 }
  0x45   : > { %p750_p9 = pnand %p749_p5, %p743_p3 }
  0x47   : > { %753 = shalt.err (!%p750_p9)
}
  0x48   : > { %p1548_p12 = scmp.ne.s32.totalorder %s1546_s19, 0  ;;  %p1549_p13 = scmp.lt.s32.totalorder %s1083_s30, 7 }
  0x49   : > { %p1550_p8 = scmp.ge.s32.totalorder %s1083_s30, 1 }
  0x4a   : > { %610 = dma.hbm_to_vmem [thread:$0]  (!%p1548_p12), %s1547_s1, 128, %s125_s18, [#allocation7]  }
  0x4b   : > { %p130_p0 = pnand %p1550_p8, %p1549_p13 }
  0x4c   : > { %s135_s20 = sand.u32 (!%p130_p0), 1, %s1063_s26   ;;  %p1551_p10 = scmp.ne.s32.totalorder (!%p130_p0), %s1541_s10, 0 }
  0x4d   : > { %133 = sbr.rel (%p130_p0) target bundleno = 338 (0x152), region = 24  ;;  %s1246_s21 = sshll.u32 (!%p130_p0), %s135_s20, 3 }
  0x4e   : > { %s136_s25 = scalar_lea.sflag (!%p130_p0), [#allocation7], %s135_s20 }
  0x54   : > { %1021 = dma.done.wait (%p1551_p10), %s136_s25, 128  }
  0x55   : > { %1023 = vsyncadd (%p1551_p10), %s136_s25, 4294967168  ;;  %s1518_s18 = sand.u32 1, %s1051_s23   ;;  %s1255_s19 = sshll.u32 %s1067_s27, 3 }
  0x56   : > { %s1259_s5 = sshll.u32 %s1518_s18, 3  ;;  %s162_s8 = sshra.s32 %s1255_s19, 7 }
  0x57   : > { %s164_s9 = sadd.s32 %s1071_s0, %s162_s8  ;;  %s167_s11 = sand.u32 127, %s1255_s19 }
  0x58   : > { %s574_s10 = sshll.u32 %s164_s9, 7  ;;  %s1087_s13 = smov [#allocation2]  }
  0x59   : > { %s168_s12 = sadd.s32 %s574_s10, %s167_s11  ;;  %s180_s17 = sshll.u32 %s1087_s13, 4  ;;  %s1265_s17 = int_to_ptr.vmem [resolvable:$true] %s180_s17 }
  0x5a   : > { %p161_p2 = scmp.lt.s32.totalorder %s1255_s19, 4  ;;  %s169_s20 = sld [smem:[#allocation5 + %s168_s12]] }
  0x5b   : > { %s1268_s25 = sadd.s32 1, %s1255_s19  ;;  %s1088_s9 = smov [#allocation2 + $0x1]  }
  0x5c   : > { %s186_s4 = sshra.s32 %s1268_s25, 7  ;;  %s191_s1 = sand.u32 127, %s1268_s25 }
  0x5d   : > { %s188_s18 = sadd.s32 %s1071_s0, %s186_s4  ;;  %p185_p3 = scmp.lt.s32.totalorder %s1268_s25, 4 }
  0x5e   : > { %s576_s8 = sshll.u32 %s188_s18, 7  ;;  %s206_s11 = sshll.u32 %s1088_s9, 4  ;;  %s1277_s11 = int_to_ptr.vmem [resolvable:$true] %s206_s11 }
  0x5f   : > { %s192_s7 = sadd.s32 %s576_s8, %s191_s1  ;;  %s1275_s13 = sadd.s32 2, %s1255_s19 }
  0x60   : > { %s1576_s20 = smov (%p161_p2, %s169_s20), 0  ;;  %s193_s10 = sld [smem:[#allocation5 + %s192_s7]] }
  0x61   : > { %s575_s12 = sshll.u32 %s1576_s20, 4  ;;  %s212_s26 = sshra.s32 %s1275_s13, 7 }
  0x62   : > { %s172_s28 = scalar_lea.hbm %s1513_s2, %s575_s12  ;;  %s1286_s1 = scalar_lea.hbm %s1513_s2, 1024 }
  0x63   : > { %s754_s4 = scalar_lea.hbm %s172_s28, 16  ;;  %p757_p6 = scmp.lt.u32.totalorder %s172_s28, %s1513_s2 }
  0x64   : > { %p755_p5 = scmp.ne.s32.totalorder %s172_s28, %s754_s4  ;;  %p758_p7 = scmp.lt.u32.totalorder %s1286_s1, %s754_s4 }
  0x65   : > { %p760_p1 = scmp.lt.u32.totalorder %s754_s4, %s172_s28 }
  0x66   : > { %p759_p11 = por %p758_p7, %p757_p6 }
  0x68   : > { %p761_p4 = por %p760_p1, %p759_p11 }
  0x6a   : > { %p762_p9 = pnand %p761_p4, %p755_p5 }
  0x6c   : > { %765 = shalt.err (!%p762_p9)  }
  0x6d   : > { %s766_s29 = scalar_lea.vmem %s1265_s17, 16  ;;  %s1295_s6 = scalar_lea.vmem %s1265_s17, 128 }
  0x6e   : > { %p767_p12 = scmp.ne.s32.totalorder %s1265_s17, %s766_s29  ;;  %p771_p13 = scmp.lt.s32.totalorder %s1265_s17, %s1265_s17 }
  0x6f   : > { %p772_p8 = scmp.lt.s32.totalorder %s1295_s6, %s766_s29 }
  0x71   : > { %p773_p0 = por %p772_p8, %p771_p13 }
  0x73   : > { %p774_p10 = pnand %p773_p0, %p767_p12 }
  0x75   : > { %777 = shalt.err (!%p774_p10)  }
  0x76   : > { %183 = dma.hbm_to_vmem [thread:$0]  %s172_s28, 16, %s1265_s17, [#allocation3] }
  0x77   : > { %s214_s14 = sadd.s32 %s1071_s0, %s212_s26  ;;  %s217_s20 = sand.u32 127, %s1275_s13 }
  0x78   : > { %s578_s9 = sshll.u32 %s214_s14, 7  ;;  %s1578_s10 = smov (%p185_p3, %s193_s10), 0 }
  0x79   : > { %s218_s12 = sadd.s32 %s578_s9, %s217_s20  ;;  %s1089_s4 = smov [#allocation2 + $0x2]  }
  0x7a   : > { %s232_s18 = sshll.u32 %s1089_s4, 4  ;;  %s577_s8 = sshll.u32 %s1578_s10, 4  ;;  %s1319_s18 = int_to_ptr.vmem [resolvable:$true] %s232_s18 }
  0x7b   : > { %s219_s7 = sld [smem:[#allocation5 + %s218_s12]]  ;;  %s196_s16 = scalar_lea.hbm %s1513_s2, %s577_s8 }
  0x7c   : > { %p211_p2 = scmp.lt.s32.totalorder %s1275_s13, 4  ;;  %s778_s22 = scalar_lea.hbm %s196_s16, 16 }
  0x7d   : > { %p779_p5 = scmp.ne.s32.totalorder %s196_s16, %s778_s22  ;;  %p781_p6 = scmp.lt.u32.totalorder %s196_s16, %s1513_s2 }
  0x7e   : > { %p782_p7 = scmp.lt.u32.totalorder %s1286_s1, %s778_s22  ;;  %p784_p1 = scmp.lt.u32.totalorder %s778_s22, %s196_s16 }
  0x80   : > { %p783_p11 = por %p782_p7, %p781_p6 }
  0x82   : > { %p785_p3 = por %p784_p1, %p783_p11 }
  0x84   : > { %p786_p4 = pnand %p785_p3, %p779_p5 }
  0x86   : > { %789 = shalt.err (!%p786_p4)  }
  0x87   : > { %s790_s24 = scalar_lea.vmem %s1277_s11, 16  ;;  %p795_p12 = scmp.lt.s32.totalorder %s1277_s11, %s1265_s17 }
  0x88   : > { %p791_p9 = scmp.ne.s32.totalorder %s1277_s11, %s790_s24  ;;  %p796_p13 = scmp.lt.s32.totalorder %s1295_s6, %s790_s24 }
  0x8a   : > { %p797_p8 = por %p796_p13, %p795_p12 }
  0x8c   : > { %p798_p0 = pnand %p797_p8, %p791_p9 }
  0x8e   : > { %801 = shalt.err (!%p798_p0)  }
  0x8f   : > { %209 = dma.hbm_to_vmem [thread:$0]  %s196_s16, 16, %s1277_s11, [#allocation3 + $0x1] }
  0x90   : > { %s1322_s3 = sadd.s32 3, %s1255_s19  ;;  %s1580_s7 = smov (%p211_p2, %s219_s7), 0 }
  0x91   : > { %s238_s22 = sshra.s32 %s1322_s3, 7  ;;  %s243_s28 = sand.u32 127, %s1322_s3 }
  0x92   : > { %s240_s26 = sadd.s32 %s1071_s0, %s238_s22  ;;  %s1090_s25 = smov [#allocation2 + $0x3]  }
  0x93   : > { %s580_s30 = sshll.u32 %s240_s26, 7  ;;  %s258_s10 = sshll.u32 %s1090_s25, 4  ;;  %s1346_s10 = int_to_ptr.vmem [resolvable:$true] %s258_s10 }
  0x94   : > { %s579_s14 = sshll.u32 %s1580_s7, 4  ;;  %s244_s20 = sadd.s32 %s580_s30, %s243_s28 }
  0x95   : > { %s222_s16 = scalar_lea.hbm %s1513_s2, %s579_s14  ;;  %s245_s11 = sld [smem:[#allocation5 + %s244_s20]] }
  0x96   : > { %s802_s4 = scalar_lea.hbm %s222_s16, 16  ;;  %p805_p5 = scmp.lt.u32.totalorder %s222_s16, %s1513_s2 }
  0x97   : > { %p803_p10 = scmp.ne.s32.totalorder %s222_s16, %s802_s4  ;;  %p806_p6 = scmp.lt.u32.totalorder %s1286_s1, %s802_s4 }
  0x98   : > { %p808_p11 = scmp.lt.u32.totalorder %s802_s4, %s222_s16 }
  0x99   : > { %p807_p7 = por %p806_p6, %p805_p5 }
  0x9b   : > { %p809_p2 = por %p808_p11, %p807_p7 }
  0x9d   : > { %p810_p1 = pnand %p809_p2, %p803_p10 }
  0x9f   : > { %813 = shalt.err (!%p810_p1)  }
  0xa0   : > { %s814_s13 = scalar_lea.vmem %s1319_s18, 16  ;;  %p819_p4 = scmp.lt.s32.totalorder %s1319_s18, %s1265_s17 }
  0xa1   : > { %p815_p3 = scmp.ne.s32.totalorder %s1319_s18, %s814_s13  ;;  %p820_p9 = scmp.lt.s32.totalorder %s1295_s6, %s814_s13 }
  0xa3   : > { %p821_p12 = por %p820_p9, %p819_p4 }
  0xa5   : > { %p822_p13 = pnand %p821_p12, %p815_p3 }
  0xa7   : > { %825 = shalt.err (!%p822_p13)  }
  0xa8   : > { %235 = dma.hbm_to_vmem [thread:$0]  %s222_s16, 16, %s1319_s18, [#allocation3 + $0x2] }
  0xa9   : > { %p237_p8 = scmp.lt.s32.totalorder %s1322_s3, 4  ;;  %s1344_s7 = sadd.s32 4, %s1255_s19 }
  0xaa   : > { %s264_s24 = sshra.s32 %s1344_s7, 7  ;;  %s269_s26 = sand.u32 127, %s1344_s7 }
  0xab   : > { %s266_s22 = sadd.s32 %s1071_s0, %s264_s24  ;;  %s1582_s11 = smov (%p237_p8, %s245_s11), 0 }
  0xac   : > { %s582_s28 = sshll.u32 %s266_s22, 7  ;;  %s1091_s25 = smov [#allocation2 + $0x4]  }
  0xad   : > { %s270_s30 = sadd.s32 %s582_s28, %s269_s26  ;;  %s284_s14 = sshll.u32 %s1091_s25, 4  ;;  %s1365_s14 = int_to_ptr.vmem [resolvable:$true] %s284_s14 }
  0xae   : > { %s581_s20 = sshll.u32 %s1582_s11, 4  ;;  %s271_s9 = sld [smem:[#allocation5 + %s270_s30]] }
  0xaf   : > { %s248_s12 = scalar_lea.hbm %s1513_s2, %s581_s20  ;;  %p263_p0 = scmp.lt.s32.totalorder %s1344_s7, 4 }
  0xb0   : > { %s826_s16 = scalar_lea.hbm %s248_s12, 16  ;;  %p829_p5 = scmp.lt.u32.totalorder %s248_s12, %s1513_s2 }
  0xb1   : > { %p827_p10 = scmp.ne.s32.totalorder %s248_s12, %s826_s16  ;;  %p830_p6 = scmp.lt.u32.totalorder %s1286_s1, %s826_s16 }
  0xb2   : > { %p832_p11 = scmp.lt.u32.totalorder %s826_s16, %s248_s12 }
  0xb3   : > { %p831_p7 = por %p830_p6, %p829_p5 }
  0xb5   : > { %p833_p2 = por %p832_p11, %p831_p7 }
  0xb7   : > { %p834_p1 = pnand %p833_p2, %p827_p10 }
  0xb9   : > { %837 = shalt.err (!%p834_p1)  }
  0xba   : > { %s838_s11 = scalar_lea.vmem %s1346_s10, 16  ;;  %p843_p4 = scmp.lt.s32.totalorder %s1346_s10, %s1265_s17 }
  0xbb   : > { %p839_p3 = scmp.ne.s32.totalorder %s1346_s10, %s838_s11  ;;  %p844_p9 = scmp.lt.s32.totalorder %s1295_s6, %s838_s11 }
  0xbd   : > { %p845_p12 = por %p844_p9, %p843_p4 }
  0xbf   : > { %p846_p13 = pnand %p845_p12, %p839_p3 }
  0xc1   : > { %849 = shalt.err (!%p846_p13)  }
  0xc2   : > { %261 = dma.hbm_to_vmem [thread:$0]  %s248_s12, 16, %s1346_s10, [#allocation3 + $0x3] }
  0xc3   : > { %s1368_s29 = sadd.s32 5, %s1255_s19  ;;  %s1584_s9 = smov (%p263_p0, %s271_s9), 0 }
  0xc4   : > { %s290_s13 = sshra.s32 %s1368_s29, 7  ;;  %s295_s22 = sand.u32 127, %s1368_s29 }
  0xc5   : > { %s292_s24 = sadd.s32 %s1071_s0, %s290_s13  ;;  %s1092_s28 = smov [#allocation2 + $0x5]  }
  0xc6   : > { %s584_s26 = sshll.u32 %s292_s24, 7  ;;  %s310_s30 = sshll.u32 %s1092_s28, 4  ;;  %s1392_s30 = int_to_ptr.vmem [resolvable:$true] %s310_s30 }
  0xc7   : > { %s583_s25 = sshll.u32 %s1584_s9, 4  ;;  %s296_s20 = sadd.s32 %s584_s26, %s295_s22 }
  0xc8   : > { %s274_s10 = scalar_lea.hbm %s1513_s2, %s583_s25  ;;  %s297_s12 = sld [smem:[#allocation5 + %s296_s20]] }
  0xc9   : > { %s850_s16 = scalar_lea.hbm %s274_s10, 16  ;;  %p853_p10 = scmp.lt.u32.totalorder %s274_s10, %s1513_s2 }
  0xca   : > { %p851_p8 = scmp.ne.s32.totalorder %s274_s10, %s850_s16  ;;  %p854_p5 = scmp.lt.u32.totalorder %s1286_s1, %s850_s16 }
  0xcb   : > { %p856_p7 = scmp.lt.u32.totalorder %s850_s16, %s274_s10 }
  0xcc   : > { %p855_p6 = por %p854_p5, %p853_p10 }
  0xce   : > { %p857_p0 = por %p856_p7, %p855_p6 }
  0xd0   : > { %p858_p11 = pnand %p857_p0, %p851_p8 }
  0xd2   : > { %861 = shalt.err (!%p858_p11)  }
  0xd3   : > { %s862_s7 = scalar_lea.vmem %s1365_s14, 16  ;;  %p867_p1 = scmp.lt.s32.totalorder %s1365_s14, %s1265_s17 }
  0xd4   : > { %p863_p2 = scmp.ne.s32.totalorder %s1365_s14, %s862_s7  ;;  %p868_p3 = scmp.lt.s32.totalorder %s1295_s6, %s862_s7 }
  0xd6   : > { %p869_p4 = por %p868_p3, %p867_p1 }
  0xd8   : > { %p870_p9 = pnand %p869_p4, %p863_p2 }
  0xda   : > { %873 = shalt.err (!%p870_p9)  }
  0xdb   : > { %287 = dma.hbm_to_vmem [thread:$0]  %s274_s10, 16, %s1365_s14, [#allocation3 + $0x4] }
  0xdc   : > { %p289_p12 = scmp.lt.s32.totalorder %s1368_s29, 4  ;;  %s1390_s9 = sadd.s32 6, %s1255_s19 }
  0xdd   : > { %s316_s11 = sshra.s32 %s1390_s9, 7  ;;  %s321_s24 = sand.u32 127, %s1390_s9 }
  0xde   : > { %s318_s13 = sadd.s32 %s1071_s0, %s316_s11  ;;  %s1586_s12 = smov (%p289_p12, %s297_s12), 0 }
  0xdf   : > { %s586_s22 = sshll.u32 %s318_s13, 7  ;;  %p315_p13 = scmp.lt.s32.totalorder %s1390_s9, 4 }
  0xe0   : > { %s322_s26 = sadd.s32 %s586_s22, %s321_s24  ;;  %s585_s28 = sshll.u32 %s1586_s12, 4 }
  0xe1   : > { %s323_s25 = sld [smem:[#allocation5 + %s322_s26]]  ;;  %s300_s29 = scalar_lea.hbm %s1513_s2, %s585_s28 }
  0xe2   : > { %s1093_s18 = smov [#allocation2 + $0x6]   ;;  %s874_s10 = scalar_lea.hbm %s300_s29, 16 }
  0xe3   : > { %s336_s3 = sshll.u32 %s1093_s18, 4  ;;  %p875_p8 = scmp.ne.s32.totalorder %s300_s29, %s874_s10  ;;  %s337_s3 = int_to_ptr.vmem [resolvable:$true] %s336_s3 }
  0xe4   : > { %p877_p10 = scmp.lt.u32.totalorder %s300_s29, %s1513_s2  ;;  %p878_p5 = scmp.lt.u32.totalorder %s1286_s1, %s874_s10 }
  0xe5   : > { %p880_p7 = scmp.lt.u32.totalorder %s874_s10, %s300_s29 }
  0xe6   : > { %p879_p6 = por %p878_p5, %p877_p10 }
  0xe8   : > { %p881_p0 = por %p880_p7, %p879_p6 }
  0xea   : > { %p882_p11 = pnand %p881_p0, %p875_p8 }
  0xec   : > { %885 = shalt.err (!%p882_p11)  }
  0xed   : > { %s886_s12 = scalar_lea.vmem %s1392_s30, 16  ;;  %p891_p1 = scmp.lt.s32.totalorder %s1392_s30, %s1265_s17 }
  0xee   : > { %p887_p2 = scmp.ne.s32.totalorder %s1392_s30, %s886_s12  ;;  %p892_p3 = scmp.lt.s32.totalorder %s1295_s6, %s886_s12 }
  0xf0   : > { %p893_p4 = por %p892_p3, %p891_p1 }
  0xf2   : > { %p894_p9 = pnand %p893_p4, %p887_p2 }
  0xf4   : > { %897 = shalt.err (!%p894_p9)  }
  0xf5   : > { %313 = dma.hbm_to_vmem [thread:$0]  %s300_s29, 16, %s1392_s30, [#allocation3 + $0x5] }
  0xf6   : > { %s1412_s8 = sadd.s32 7, %s1255_s19  ;;  %s1588_s25 = smov (%p315_p13, %s323_s25), 0 }
  0xf7   : > { %s342_s7 = sshra.s32 %s1412_s8, 7  ;;  %s347_s13 = sand.u32 127, %s1412_s8 }
  0xf8   : > { %s344_s11 = sadd.s32 %s1071_s0, %s342_s7  ;;  %s587_s22 = sshll.u32 %s1588_s25, 4 }
  0xf9   : > { %s588_s24 = sshll.u32 %s344_s11, 7  ;;  %s326_s14 = scalar_lea.hbm %s1513_s2, %s587_s22 }
  0xfa   : > { %s348_s26 = sadd.s32 %s588_s24, %s347_s13  ;;  %s898_s10 = scalar_lea.hbm %s326_s14, 16 }
  0xfb   : > { %s349_s18 = sld [smem:[#allocation5 + %s348_s26]]  ;;  %p899_p12 = scmp.ne.s32.totalorder %s326_s14, %s898_s10 }
  0xfc   : > { %p901_p8 = scmp.lt.u32.totalorder %s326_s14, %s1513_s2  ;;  %p902_p10 = scmp.lt.u32.totalorder %s1286_s1, %s898_s10 }
  0xfd   : > { %p904_p6 = scmp.lt.u32.totalorder %s898_s10, %s326_s14 }
  0xfe   : > { %p903_p5 = por %p902_p10, %p901_p8 }
 0x100   : > { %p905_p7 = por %p904_p6, %p903_p5 }
 0x102   : > { %p906_p0 = pnand %p905_p7, %p899_p12 }
 0x104   : > { %909 = shalt.err (!%p906_p0)  }
 0x105   : > { %s910_s9 = scalar_lea.vmem %s337_s3, 16  ;;  %p915_p11 = scmp.lt.s32.totalorder %s337_s3, %s1265_s17 }
 0x106   : > { %p911_p13 = scmp.ne.s32.totalorder %s337_s3, %s910_s9  ;;  %p916_p2 = scmp.lt.s32.totalorder %s1295_s6, %s910_s9 }
 0x108   : > { %p917_p1 = por %p916_p2, %p915_p11 }
 0x10a   : > { %p918_p3 = pnand %p917_p1, %p911_p13 }
 0x10c   : > { %921 = shalt.err (!%p918_p3)  }
 0x10d   : > { %339 = dma.hbm_to_vmem [thread:$0]  %s326_s14, 16, %s337_s3, [#allocation3 + $0x6] }
 0x10e   : > { %p341_p4 = scmp.lt.s32.totalorder %s1412_s8, 4  ;;  %s1094_s25 = smov [#allocation2 + $0x7]  }
 0x10f   : > { %s362_s16 = sshll.u32 %s1094_s25, 4  ;;  %s363_s16 = int_to_ptr.vmem [resolvable:$true] %s362_s16 }
 0x110   : > { %s1590_s18 = smov (%p341_p4, %s349_s18), 0 }
 0x111   : > { %s589_s4 = sshll.u32 %s1590_s18, 4 }
 0x112   : > { %s352_s11 = scalar_lea.hbm %s1513_s2, %s589_s4 }
 0x113   : > { %s922_s13 = scalar_lea.hbm %s352_s11, 16  ;;  %p925_p12 = scmp.lt.u32.totalorder %s352_s11, %s1513_s2 }
 0x114   : > { %p923_p9 = scmp.ne.s32.totalorder %s352_s11, %s922_s13  ;;  %p926_p8 = scmp.lt.u32.totalorder %s1286_s1, %s922_s13 }
 0x115   : > { %p928_p5 = scmp.lt.u32.totalorder %s922_s13, %s352_s11 }
 0x116   : > { %p927_p10 = por %p926_p8, %p925_p12 }
 0x118   : > { %p929_p6 = por %p928_p5, %p927_p10 }
 0x11a   : > { %p930_p7 = pnand %p929_p6, %p923_p9 }
 0x11c   : > { %933 = shalt.err (!%p930_p7)  }
 0x11d   : > { %s934_s3 = scalar_lea.vmem %s363_s16, 16  ;;  %p939_p13 = scmp.lt.s32.totalorder %s363_s16, %s1265_s17 }
 0x11e   : > { %p935_p0 = scmp.ne.s32.totalorder %s363_s16, %s934_s3  ;;  %p940_p11 = scmp.lt.s32.totalorder %s1295_s6, %s934_s3 }
 0x120   : > { %p941_p2 = por %p940_p11, %p939_p13 }
 0x122   : > { %p942_p1 = pnand %p941_p2, %p935_p0 }
 0x124   : > { %945 = shalt.err (!%p942_p1)  }
 0x125   : > { %365 = dma.hbm_to_vmem [thread:$0]  %s352_s11, 16, %s363_s16, [#allocation3 + $0x7] }
 0x126   : > { %s157_s8 = scalar_lea.vmem [#allocation9], %s1259_s5 }
 0x127   : > { %1024 = dma.done.wait [#allocation3], 16 }
 0x128   : > { %1025 = vsyncadd [#allocation3], 4294967280 }
 0x129   : > { %1026 = dma.done.wait [#allocation3 + $0x1], 16 }
 0x12a   : > { %1027 = vsyncadd [#allocation3 + $0x1], 4294967280 }
 0x12b   : > { %1028 = dma.done.wait [#allocation3 + $0x2], 16 }
 0x12c   : > { %1029 = vsyncadd [#allocation3 + $0x2], 4294967280 }
 0x12d   : > { %1030 = dma.done.wait [#allocation3 + $0x3], 16 }
 0x12e   : > { %1031 = vsyncadd [#allocation3 + $0x3], 4294967280 }
 0x12f   : > { %1032 = dma.done.wait [#allocation3 + $0x4], 16 }
 0x130   : > { %1033 = vsyncadd [#allocation3 + $0x4], 4294967280 }
 0x131   : > { %1034 = dma.done.wait [#allocation3 + $0x5], 16 }
 0x132   : > { %1035 = vsyncadd [#allocation3 + $0x5], 4294967280 }
 0x133   : > { %1036 = dma.done.wait [#allocation3 + $0x6], 16 }
 0x134   : > { %1037 = vsyncadd [#allocation3 + $0x6], 4294967280 }
 0x135   : > { %1038 = dma.done.wait [#allocation3 + $0x7], 16 }
 0x136   : > { %1039 = vsyncadd [#allocation3 + $0x7], 4294967280  ;;  %v383_v0 = vlaneseq  ;;  %s602_s17 = smul.u32 3, %s1071_s0  ;;  %v385_v1 = vstv %s1255_s19  ;;  %s410_s26 = sshll.u32 %s157_s8, 4  ;;  %v389_v5 = vld [vmem:[#allocation2] sm:$0xff]  ;;  %s1451_s26 = int_to_ptr.vmem [resolvable:$true] %s410_s26 }
 0x137   : > { %s1552_s28 = scalar_lea.vmem [#allocation6], %s1246_s21  ;;  %s1553_s18 = sld [smem:[#allocation50_spill]] }
 0x138   : > { %v384_v2 = vshrl.u32 %v383_v0, 7  ;;  %s406_s1 = sadd.s32 %s1067_s27, %s602_s17  ;;  %v388_v4 = vld [vmem:[%s1552_s28] sm:$0xff]  ;;  %s1554_s27 = sand.u32 1, %s1051_s23  }
 0x139   : > { %s591_s6 = sshll.u32 %s406_s1, 7  ;;  %s395_s0 = scalar_lea.sflag [#allocation8], %s1554_s27 }
 0x13a   : > { %v386_v3 = vadd.s32 %v385_v1, %v384_v2  ;;  %s946_s19 = scalar_lea.vmem %s1451_s26, 128  ;;  %p1555_p4 = scmp.ne.s32.totalorder %s1543_s15, 0 }
 0x13b   : > { %p947_p3 = scmp.ne.s32.totalorder %s1451_s26, %s946_s19  ;;  %s1095_s21 = smov [#allocation9]  }
 0x13c   : > { %vm387_vm0 = vcmp.lt.s32.totalorder %v386_v3, 4  ;;  %s950_s30 = sshll.u32 %s1095_s21, 4  ;;  %s951_s30 = int_to_ptr.vmem [resolvable:$false] %s950_s30 }
 0x13d   : > { %s1449_s10 = scalar_lea.hbm %s1553_s18, %s591_s6  ;;  %v392_v6 = vsel %vm387_vm0, %v388_v4, %v389_v5  ;;  %p948_p9 = pnand %p947_p3, %p1555_p4 }
 0x13e   : > { %393 = vst [vmem:[%s157_s8] sm:$0xff] %v392_v6  ;;  %s952_s29 = scalar_lea.vmem %s951_s30, 256  ;;  %p953_p8 = scmp.lt.s32.totalorder %s1451_s26, %s951_s30 }
 0x13f   : > { %p949_p12 = pneg %p948_p9  ;;  %p954_p10 = scmp.lt.s32.totalorder %s952_s29, %s946_s19 }
 0x141   : > { %p955_p5 = por %p954_p10, %p953_p8 }
 0x143   : > { %p956_p6 = pnand %p955_p5, %p949_p12 }
 0x145   : > { %959 = shalt.err (!%p956_p6)
}
 0x146   : > { %s960_s5 = scalar_lea.hbm %s1449_s10, 128  ;;  %s964_s16 = scalar_lea.hbm %s1553_s18, 768 }
 0x147   : > { %p961_p7 = scmp.ne.s32.totalorder %s1449_s10, %s960_s5  ;;  %p965_p11 = scmp.lt.u32.totalorder %s1449_s10, %s1553_s18 }
 0x148   : > { %p966_p2 = scmp.lt.u32.totalorder %s964_s16, %s960_s5  ;;  %p968_p3 = scmp.lt.u32.totalorder %s960_s5, %s1449_s10 }
 0x149   : > { %p962_p0 = pnand %p961_p7, %p1555_p4 }
 0x14a   : > { %p967_p1 = por %p966_p2, %p965_p11 }
 0x14b   : > { %p963_p13 = pneg %p962_p0 }
 0x14c   : > { %p969_p9 = por %p968_p3, %p967_p1 }
 0x14e   : > { %p970_p12 = pnand %p969_p9, %p963_p13 }
 0x150   : > { %973 = shalt.err (!%p970_p12)
}
 0x151   : > { %605 = dma.vmem_to_hbm [thread:$0]  (%p1555_p4), %s1451_s26, 128, %s1449_s10, %s395_s0  }
 0x152 PF: > { %s1556_s7 = sld [smem:[#allocation44_spill]]  ;;  %s1557_s11 = sld [smem:[#allocation39_spill]] }
 0x153   : > { %s1558_s13 = sld [smem:[#allocation48_spill]] }
 0x158   : > { %p616_p8 = scmp.ge.s32.totalorder %s1556_s7, 2  ;;  %s422_s24 = sand.u32 1, %s1557_s11  }
 0x159   : > { %p1559_p10 = scmp.ne.s32.totalorder %s1558_s13, 0  ;;  %s423_s22 = scalar_lea.sflag [#allocation8], %s422_s24 }
 0x15b   : > { %p612_p5 = pnand %p616_p8, %p1559_p10 }
 0x15d   : > { %1041 = dma.done.wait (!%p612_p5), %s423_s22, 128  }
 0x15e   : > { %1043 = vsyncadd (!%p612_p5), %s423_s22, 4294967168  ;;  %s23_s30 = sadd.s32 1, %s1556_s7   ;;  %s1560_s3 = sld [smem:[#allocation40_spill]] }
 0x15f   : > { %p20_p6 = scmp.ge.s32.totalorder %s23_s30, 8   ;;  %s1561_s24 = sld [smem:[#allocation47_spill]] }
 0x160   : > { %s1562_s25 = sld [smem:[#allocation41_spill]]  ;;  %s1563_s27 = sld [smem:[#allocation42_spill]] }
 0x161   : > { %s1564_s0 = sld [smem:[#allocation43_spill]]  ;;  %s1565_s28 = sld [smem:[#allocation45_spill]] }
 0x162   : > { %s1566_s29 = sld [smem:[#allocation46_spill]]  ;;  %s1567_s22 = smov %s1051_s23 }
 0x163   : > { %s1495_s26 = smov 0   ;;  %22 = sbr.rel (!%p20_p6) target bundleno = 21 (0x15), region = 130 }
 0x164   : > { %s1568_s23 = smov %s1560_s3 }
 0x16a   :  { %428 = vsyncpa [#allocation7], 1 }
 0x16b   :  { %430 = vsyncpa [#allocation7 + $0x1], 1 }
 0x16c   :  { %431 = vsyncpa [#allocation8], 1 }
 0x16d   :  { %433 = vsyncpa [#allocation8 + $0x1], 1 }
 0x16e   :  { %434 = vsyncmov [#allocation3] }
 0x171   :  { %s435_s15 = vpop.sfrf %434 }
 0x172   :  { %p594_p4 = scmp.ne.s32.totalorder %s435_s15, 0 }
 0x174   :  { %439 = shalt.err (%p594_p4)  }
 0x175   :  { %441 = vsyncmov [#allocation3 + $0x1] }
 0x178   :  { %s442_s8 = vpop.sfrf %441 }
 0x179   :  { %p595_p7 = scmp.ne.s32.totalorder %s442_s8, 0 }
 0x17b   :  { %446 = shalt.err (%p595_p7)  }
 0x17c   :  { %448 = vsyncmov [#allocation3 + $0x2] }
 0x17f   :  { %s449_s17 = vpop.sfrf %448 }
 0x180   :  { %p596_p0 = scmp.ne.s32.totalorder %s449_s17, 0 }
 0x182   :  { %453 = shalt.err (%p596_p0)  }
 0x183   :  { %455 = vsyncmov [#allocation3 + $0x3] }
 0x186   :  { %s456_s1 = vpop.sfrf %455 }
 0x187   :  { %p597_p13 = scmp.ne.s32.totalorder %s456_s1, 0 }
 0x189   :  { %460 = shalt.err (%p597_p13)  }
 0x18a   :  { %462 = vsyncmov [#allocation3 + $0x4] }
 0x18d   :  { %s463_s2 = vpop.sfrf %462 }
 0x18e   :  { %p598_p11 = scmp.ne.s32.totalorder %s463_s2, 0 }
 0x190   :  { %467 = shalt.err (%p598_p11)  }
 0x191   :  { %469 = vsyncmov [#allocation3 + $0x5] }
 0x194   :  { %s470_s23 = vpop.sfrf %469 }
 0x195   :  { %p599_p2 = scmp.ne.s32.totalorder %s470_s23, 0 }
 0x197   :  { %474 = shalt.err (%p599_p2)  }
 0x198   :  { %476 = vsyncmov [#allocation3 + $0x6] }
 0x19b   :  { %s477_s6 = vpop.sfrf %476 }
 0x19c   :  { %p600_p1 = scmp.ne.s32.totalorder %s477_s6, 0 }
 0x19e   :  { %481 = shalt.err (%p600_p1)  }
 0x19f   :  { %483 = vsyncmov [#allocation3 + $0x7] }
 0x1a2   :  { %s484_s26 = vpop.sfrf %483 }
 0x1a3   :  { %p601_p3 = scmp.ne.s32.totalorder %s484_s26, 0 }
 0x1a5   :  { %488 = shalt.err (%p601_p3)  }

</bundles_post_ra>
